<compile_context>
chip_gen: v7x
topology: tpu7x:2x2x1
jax: 0.10.0
libtpu: 0.0.40
codegen_flags: <defaults>
</compile_context>

<pallas_src>
import jax
import jax.numpy as jnp
from jax.experimental import pallas as pl
from jax.experimental.pallas import tpu as pltpu


def _round_up(n, m):
    return ((n + m - 1) // m) * m


def _choose_tm(B, tm_max):
    """Batch tile: big enough to amortize ~0.35us/step grid overhead, small
    enough to keep >= ~8 grid steps (v7x 2-TC sharding + pipelining depth)."""
    if B <= 8:
        return B
    tm = _round_up(pl.cdiv(B, 8), 8)          # aim for ~8 steps
    return max(8, min(tm_max, tm, _round_up(B, 8)))


# ---------------------------------------------------------------------------
# Folded head kernel: logits = x @ W_eff + b_eff.
# ---------------------------------------------------------------------------
def folded_head_kernel(x_ref, w_ref, b_ref, out_ref):
    logits = jnp.dot(x_ref[...], w_ref[...], preferred_element_type=jnp.float32)
    out_ref[...] = (logits + b_ref[...]).astype(out_ref.dtype)


# ---------------------------------------------------------------------------
# Two-layer kernel (only used when the embedding must be materialized).
# Canonical (K, N) weight layout, f32 accumulation, no explicit VMEM scratch.
# ---------------------------------------------------------------------------
def two_layer_head_kernel(x_ref, w1_ref, b1_ref, w2_ref, b2_ref, out_ref, emb_ref):
    emb = jnp.dot(x_ref[...], w1_ref[...],
                  preferred_element_type=jnp.float32) + b1_ref[...]
    emb_ref[...] = emb.astype(emb_ref.dtype)
    logits = jnp.dot(emb.astype(w2_ref.dtype), w2_ref[...],
                     preferred_element_type=jnp.float32) + b2_ref[...]
    out_ref[...] = logits.astype(out_ref.dtype)


def bottleneck_head_forward(x, w1, b1, w2, b2, *, compute_dtype=None,
                            tm_max=2048, return_embedding=False):
    """x: (B, F); w1: (Bf, F); b1: (Bf,); w2: (C, Bf); b2: (C,)  ->  (B, C).

    Weights use PyTorch nn.Linear (out_features, in_features) layout.
    If return_embedding=True, returns (logits, embedding) like the module's
    `self.embedding` side-attribute.
    """
    B, F = x.shape
    Bf = w1.shape[0]
    C = w2.shape[0]
    out_dtype = x.dtype

    tm = _choose_tm(B, tm_max)
    grid = (pl.cdiv(B, tm),)
    itemsize = jnp.dtype(x.dtype).itemsize

    if not return_embedding:
        # Fold the two linears (exact up to f32 reassociation).
        # TODO(synk): do this fold once at weight-prep time instead of per call.
        w_eff = (w2.astype(jnp.float32) @ w1.astype(jnp.float32)).T        # (F, C)
        b_eff = (w2.astype(jnp.float32) @ b1.astype(jnp.float32)
                 + b2.astype(jnp.float32)).reshape(1, C)                    # (1, C)
        if compute_dtype is not None:
            x = x.astype(compute_dtype)
            w_eff = w_eff.astype(compute_dtype)

        cost = pl.CostEstimate(
            flops=2 * B * F * C,
            transcendentals=0,
            bytes_accessed=(B * F + F * C + B * C) * itemsize + C * 4,
        )
        out = pl.pallas_call(
            folded_head_kernel,
            out_shape=jax.ShapeDtypeStruct((B, C), out_dtype),
            grid=grid,
            in_specs=[
                pl.BlockSpec((tm, F), lambda i: (i, 0)),   # x: tiled over batch
                pl.BlockSpec((F, C), lambda i: (0, 0)),    # W_eff: VMEM-resident
                pl.BlockSpec((1, C), lambda i: (0, 0)),    # b_eff: VMEM-resident
            ],
            out_specs=pl.BlockSpec((tm, C), lambda i: (i, 0)),  # unpadded logits
            compiler_params=pltpu.CompilerParams(
                dimension_semantics=("parallel",),
            ),
            cost_estimate=cost,
        )(x, w_eff, b_eff)
        return out

    # --- two-layer path: also materializes the embedding --------------------
    w1t = w1.T                                    # (F, Bf)  canonical (K, N)
    w2t = w2.T                                    # (Bf, C)
    b1r = b1.astype(jnp.float32).reshape(1, Bf)
    b2r = b2.astype(jnp.float32).reshape(1, C)
    if compute_dtype is not None:
        x = x.astype(compute_dtype)
        w1t = w1t.astype(compute_dtype)
        w2t = w2t.astype(compute_dtype)

    cost = pl.CostEstimate(
        flops=2 * B * Bf * (F + C),
        transcendentals=0,
        bytes_accessed=(B * F + F * Bf + Bf * C + B * Bf + B * C) * itemsize
        + (Bf + C) * 4,
    )
    logits, emb = pl.pallas_call(
        two_layer_head_kernel,
        out_shape=(
            jax.ShapeDtypeStruct((B, C), out_dtype),
            jax.ShapeDtypeStruct((B, Bf), out_dtype),
        ),
        grid=grid,
        in_specs=[
            pl.BlockSpec((tm, F), lambda i: (i, 0)),      # x: tiled over batch
            pl.BlockSpec((F, Bf), lambda i: (0, 0)),      # W1^T: VMEM-resident
            pl.BlockSpec((1, Bf), lambda i: (0, 0)),      # b1
            pl.BlockSpec((Bf, C), lambda i: (0, 0)),      # W2^T: VMEM-resident
            pl.BlockSpec((1, C), lambda i: (0, 0)),       # b2
        ],
        out_specs=(
            pl.BlockSpec((tm, C), lambda i: (i, 0)),      # logits
            pl.BlockSpec((tm, Bf), lambda i: (i, 0)),     # embedding
        ),
        compiler_params=pltpu.CompilerParams(
            dimension_semantics=("parallel",),
        ),
        cost_estimate=cost,
    )(x, w1t, b1r, w2t, b2r)
    return logits, emb


def reference_forward(x, w1, b1, w2, b2):
    emb = x @ w1.T + b1
    return emb @ w2.T + b2, emb


if __name__ == "__main__":
    # Small shapes consistent with the module's forward.
    batch = 8
    num_features = 32
    bottleneck_features = 200   # module default
    num_classes = 10

    key = jax.random.PRNGKey(0)
    kx, kw1, kb1, kw2, kb2 = jax.random.split(key, 5)

    x = jax.random.normal(kx, (batch, num_features), dtype=jnp.float32)
    # nn.Linear layout: weight = (out_features, in_features).
    w1 = jax.random.normal(kw1, (bottleneck_features, num_features), jnp.float32) * 0.05
    b1 = jax.random.normal(kb1, (bottleneck_features,), jnp.float32) * 0.05
    w2 = jax.random.normal(kw2, (num_classes, bottleneck_features), jnp.float32) * 0.05
    b2 = jax.random.normal(kb2, (num_classes,), jnp.float32) * 0.05

    ref_logits, ref_emb = reference_forward(x, w1, b1, w2, b2)

    # Default (folded) path — matches forward()'s returned logits.
    logits = jax.block_until_ready(bottleneck_head_forward(x, w1, b1, w2, b2))
    assert logits.shape == (batch, num_classes)
    assert jnp.allclose(logits, ref_logits, atol=1e-4, rtol=1e-4), "folded mismatch"

    # Two-layer path — for callers that also consume module.embedding.
    logits2, emb2 = bottleneck_head_forward(x, w1, b1, w2, b2, return_embedding=True)
    logits2, emb2 = jax.block_until_ready((logits2, emb2))
    assert jnp.allclose(logits2, ref_logits, atol=1e-4, rtol=1e-4), "two-layer mismatch"
    assert jnp.allclose(emb2, ref_emb, atol=1e-4, rtol=1e-4), "embedding mismatch"

    print("KERNEL_OK")
</pallas_src>

<mosaic_0001>
module attributes {stable_mosaic.version = 11 : i64} {
  func.func @folded_head_kernel(%arg0: i32, %arg1: memref<8x32xf32, #tpu.memory_space<vmem>>, %arg2: memref<32x10xf32, #tpu.memory_space<vmem>>, %arg3: memref<1x10xf32, #tpu.memory_space<vmem>>, %arg4: memref<8x10xf32, #tpu.memory_space<vmem>>) attributes {dimension_semantics = [#tpu.dimension_semantics<parallel>], iteration_bounds = array<i64: 1>, scalar_prefetch = 0 : i64, scratch_operands = 0 : i64, tpu.core_type = #tpu.core_type<tc>, window_params = [{transform_indices = @transform_0, window_bounds = array<i64: 8, 32>}, {pipeline_mode = #tpu.pipeline_mode<synchronous>, transform_indices = @transform_1, window_bounds = array<i64: 32, 10>}, {pipeline_mode = #tpu.pipeline_mode<synchronous>, transform_indices = @transform_2, window_bounds = array<i64: 1, 10>}, {transform_indices = @transform_3, window_bounds = array<i64: 8, 10>}]} {
    %c0 = arith.constant 0 : index
    %c0_0 = arith.constant 0 : index
    %0 = vector.load %arg1[%c0, %c0_0] : memref<8x32xf32, #tpu.memory_space<vmem>>, vector<8x32xf32>
    %c0_1 = arith.constant 0 : index
    %c0_2 = arith.constant 0 : index
    %1 = vector.load %arg2[%c0_1, %c0_2] : memref<32x10xf32, #tpu.memory_space<vmem>>, vector<32x10xf32>
    %cst = arith.constant dense<0.000000e+00> : vector<8x10xf32>
    %2 = tpu.matmul %0, %1, %cst {dimension_numbers = #tpu.dot_dimension_numbers<[1], [0], [0], [1], [0, 0, 1, 1], [], []>} : vector<8x32xf32>, vector<32x10xf32>, vector<8x10xf32> -> vector<8x10xf32>
    %c0_3 = arith.constant 0 : index
    %c0_4 = arith.constant 0 : index
    %3 = vector.load %arg3[%c0_3, %c0_4] : memref<1x10xf32, #tpu.memory_space<vmem>>, vector<1x10xf32>
    %4 = vector.broadcast %3 : vector<1x10xf32> to vector<8x10xf32>
    %5 = arith.addf %2, %4 : vector<8x10xf32>
    %c0_5 = arith.constant 0 : index
    %c0_6 = arith.constant 0 : index
    %6 = vector.load %arg4[%c0_5, %c0_6] : memref<8x10xf32, #tpu.memory_space<vmem>>, vector<8x10xf32>
    tpu.vector_store %arg4[%c0_5, %c0_6], %5 {strides = array<i32>} : memref<8x10xf32, #tpu.memory_space<vmem>>, vector<8x10xf32>,
    return
  }
  func.func @transform_0(%arg0: i32) -> (i32, i32) {
    %c0_i32 = arith.constant 0 : i32
    %c0_i32_0 = arith.constant 0 : i32
    return %arg0, %c0_i32 : i32, i32
  }
  func.func @transform_1(%arg0: i32) -> (i32, i32) {
    %c0_i32 = arith.constant 0 : i32
    %c0_i32_0 = arith.constant 0 : i32
    %c0_i32_1 = arith.constant 0 : i32
    return %c0_i32, %c0_i32_0 : i32, i32
  }
  func.func @transform_2(%arg0: i32) -> (i32, i32) {
    %c0_i32 = arith.constant 0 : i32
    %c0_i32_0 = arith.constant 0 : i32
    %c0_i32_1 = arith.constant 0 : i32
    return %c0_i32, %c0_i32_0 : i32, i32
  }
  func.func @transform_3(%arg0: i32) -> (i32, i32) {
    %c0_i32 = arith.constant 0 : i32
    %c0_i32_0 = arith.constant 0 : i32
    return %arg0, %c0_i32 : i32, i32
  }
}

</mosaic_0001>

<bundles_post_ra>
// kernel: tpu_custom_call.1
= control target key start
LH: loop header
LB: loop body
LE: loop exit
PB: predicated region body
PF: predicated region fallthrough
CT: control target
= control target key end

     0   :  { %v169_v3 = vmov 0.0|0.0   ;;  %vm170_vm0 = vmmov 0   ;;  %v171_v6 = vmov 0.0   ;;  %s223_s0 = inlined_call_operand.vmem [shape: f32[8,32], index: 0, kind: input, shape index: {}]   ;;  %s224_s1 = inlined_call_operand.vmem [shape: f32[32,10], index: 1, kind: input, shape index: {}]   ;;  %s225_s2 = inlined_call_operand.vmem [shape: f32[1,10], index: 2, kind: input, shape index: {}]   ;;  %s226_s3 = inlined_call_operand.hbm [shape: f32[8,10], index: 3, kind: output, shape index: {}]  }
   0x1   :  { %v16_v0 = vld [vmem:[%s224_s1] sm:$0xff]  ;;  %v17_v1 = vld [vmem:[%s224_s1 + $0x8] sm:$0xff]  ;;  %v18_v2 = vld [vmem:[%s224_s1 + $0x10] sm:$0xff]  ;;  %135 = vmatprep.subr.bf16.mxu0 %v169_v3  ;;  %132 = vmatprep.mubr.msk.f32.mxu0 %vm170_vm0, %v171_v6 }
   0x2   :  { %v136_v4 = vpack.c.bf16 %v17_v1, %v16_v0  ;;  %v19_v5 = vld [vmem:[%s224_s1 + $0x18] sm:$0xff] }
   0x3   :  { %8 = vsyncpa [#allocation3], 0  ;;  %v139_v7 = vpack.c.bf16 %v19_v5, %v18_v2  ;;  %v15_v8 = vld [vmem:[%s223_s0] sm:$0xff]  ;;  %vm27_vm1 = vcmask 261120   ;;  %s172_s24 = smov [#allocation2]   ;;  %vm101_vm2 = vcmask 80896  }
   0x4   :  { %137 = vmatpush3.bf16.msra.mxu0 %v136_v4  ;;  %v117_v9 = vld [vmem:[%s225_s2] ss:$0 sm:$0xff]  ;;  %s109_s1 = sshll.u32 %s172_s24, 4  ;;  %s110_s1 = int_to_ptr.vmem [resolvable:$true] %s109_s1 }
   0x5   :  { %138 = vmatprep.subr.bf16.mxu0 %v169_v3  ;;  %s145_s25 = scalar_lea.vmem %s110_s1, 128  ;;  %p150_p1 = scmp.lt.s32.totalorder %s110_s1, %s110_s1 }
   0x6   :  { %p146_p0 = scmp.ne.s32.totalorder %s110_s1, %s145_s25  ;;  %p151_p2 = scmp.lt.s32.totalorder %s145_s25, %s145_s25 }
   0x8   :  { %140 = vmatpush3.bf16.msra.mxu0 %v139_v7  ;;  %p152_p3 = por %p151_p2, %p150_p1 }
   0xa   :  { %p153_p4 = pnand %p152_p3, %p146_p0 }
   0xb   :  { %133 = vmatmul.mubr.msk.f32.vlgmr.msra.gmra.mrb[0].mxu0 %vm27_vm1, %v15_v8 }
  0xde   :  { %v97_v10 = vpop.f32.mrb[0].mxu0 }
  0xdf   :  { %v98_v11 = vadd.f32 %v117_v9, %v97_v10  ;;  %v134_v12 = vpop.f32.mrb[1].mxu0 }
  0xe1   :  { %102 = vst.msk [vmem:[#allocation2] sm:$0xff] %vm101_vm2, %v98_v11 }
  0xe2   :  { %156 = shalt.err (!%p153_p4)
}
  0xe3   :  { %s157_s27 = scalar_lea.hbm %s226_s3, 128 }
  0xe4   :  { %p158_p5 = scmp.ne.s32.totalorder %s226_s3, %s157_s27  ;;  %p161_p6 = scmp.lt.u32.totalorder %s157_s27, %s226_s3 }
  0xe6   :  { %p163_p7 = pnand %p161_p6, %p158_p5 }
  0xe8   :  { %166 = shalt.err (!%p163_p7)
}
  0xe9   :  { %112 = dma.vmem_to_hbm [thread:$0]  %s110_s1, 128, %s226_s3, [#allocation3]  }
  0xea   :  { %167 = dma.done.wait [#allocation3], 128  }
  0xeb   :  { %168 = vsyncadd [#allocation3], 4294967168 }
  0xec   :  { %116 = vsyncpa [#allocation3], 1 }

</bundles_post_ra>
